<compile_context>
chip_gen: v7x
topology: tpu7x:2x2x1
jax: 0.10.0
libtpu: 0.0.40
codegen_flags: <defaults>
</compile_context>

<pallas_src>
import functools
import math

import jax
import jax.numpy as jnp
from jax.experimental import pallas as pl
from jax.experimental.pallas import tpu as pltpu


def _requant_kernel(x_ref, p_ref, o_ref, *, use_recip, scale, div):
    x = x_ref[...]                    # (TR, Lp) f32
    p = p_ref[...]                    # (TR, 4)  f32: [mul, add, lo, hi]
    mul = p[:, 0:1]
    add = p[:, 1:2]
    lo = p[:, 2:3]
    hi = p[:, 3:4]

    y = x * mul + add                 # VPU elementwise, per-row lane broadcast
    if use_recip:
        y = jnp.floor(y * scale)      # D is a power of two -> bit-exact
    else:
        y = jnp.floor(y / div)        # arbitrary divisor: keep exact divide
    y = jnp.clip(y, lo, hi)
    o_ref[...] = y.astype(o_ref.dtype)


def requantisation(x, mul, add, zero, n_levels, div=float(2 ** 24)):
    """x: (N, C, H, W) float32.  mul/add/zero/n_levels: per-channel (C,) or scalar."""
    N, C, H, W = x.shape
    R, L = N * C, H * W
    x2 = x.astype(jnp.float32).reshape(R, L)

    # --- per-channel params -> per-row vectors, packed as (R, 4) ------------
    def per_row(p):
        p = jnp.asarray(p, dtype=jnp.float32).reshape(-1)
        p = jnp.broadcast_to(p, (C,))
        return jnp.broadcast_to(p[None, :], (N, C)).reshape(R)

    mul_r = per_row(mul)
    add_r = per_row(add)
    zero_r = per_row(zero)
    nlev_r = per_row(n_levels)
    lo_r = zero_r
    hi_r = zero_r + nlev_r - 1.0
    params = jnp.stack([mul_r, add_r, lo_r, hi_r], axis=1)       # (R, 4)

    # --- lane-dense last dim: pad L to a multiple of 128 ---------------------
    Lp = max(128, ((L + 127) // 128) * 128)
    if Lp != L:
        x2 = jnp.pad(x2, ((0, 0), (0, Lp - L)))

    # --- row tile: ~2 MiB x-block, multiple of 8, capped by (padded) R -------
    target_rows = max(8, (2 * 1024 * 1024) // (Lp * 4))
    TR = min(((R + 7) // 8) * 8, (target_rows // 8) * 8)
    TR = max(int(TR), 8)
    Rp = ((R + TR - 1) // TR) * TR                               # pad R to TR
    if Rp != R:
        x2 = jnp.pad(x2, ((0, Rp - R), (0, 0)))
        params = jnp.pad(params, ((0, Rp - R), (0, 0)))

    grid = (Rp // TR,)

    # --- static divisor handling ---------------------------------------------
    d = float(div)
    mant, _ = math.frexp(d)
    is_pow2 = (mant == 0.5) and (d > 0.0)
    kernel = functools.partial(
        _requant_kernel,
        use_recip=is_pow2,
        scale=(1.0 / d) if is_pow2 else 1.0,
        div=d,
    )

    row_spec = lambda i: (i, 0)
    cost = pl.CostEstimate(
        flops=5 * Rp * Lp,
        transcendentals=0,
        bytes_accessed=2 * Rp * Lp * 4 + Rp * 4 * 4,
    )

    out2 = pl.pallas_call(
        kernel,
        out_shape=jax.ShapeDtypeStruct((Rp, Lp), jnp.float32),
        grid_spec=pltpu.PrefetchScalarGridSpec(
            num_scalar_prefetch=0,
            grid=grid,
            in_specs=[
                pl.BlockSpec((TR, Lp), row_spec),   # x
                pl.BlockSpec((TR, 4), row_spec),    # packed [mul, add, lo, hi]
            ],
            out_specs=pl.BlockSpec((TR, Lp), row_spec),
        ),
        compiler_params=pltpu.CompilerParams(
            dimension_semantics=("parallel",)),
        cost_estimate=cost,
    )(x2, params)

    return out2[:R, :L].reshape(N, C, H, W)


def _reference(x, mul, add, zero, n_levels, div=float(2 ** 24)):
    m = jnp.asarray(mul, jnp.float32).reshape(1, -1, 1, 1)
    a = jnp.asarray(add, jnp.float32).reshape(1, -1, 1, 1)
    z = jnp.asarray(zero, jnp.float32).reshape(1, -1, 1, 1)
    n = jnp.asarray(n_levels, jnp.float32).reshape(1, -1, 1, 1)
    y = x * m + a
    y = jnp.floor(y / div)
    return jnp.clip(y, z, z + n - 1.0)


if __name__ == "__main__":
    key = jax.random.PRNGKey(0)
    N, C, H, W = 2, 4, 16, 16
    D = float(2 ** 24)

    # Integer-valued activations (as produced by an integer conv accumulator).
    kx, km, ka = jax.random.split(key, 3)
    x = jnp.round(
        jax.random.uniform(kx, (N, C, H, W), jnp.float32, -4096.0, 4096.0))

    # Deterministic per-channel requantisation parameters (buffers in __init__).
    mul = jnp.round(
        jax.random.uniform(km, (C,), jnp.float32, 1000.0, 60000.0))
    add = jnp.round(
        jax.random.uniform(ka, (C,), jnp.float32, -1e6, 1e6))
    zero = jnp.full((C,), -128.0, jnp.float32)       # e.g. signed int8 output
    n_levels = jnp.full((C,), 256.0, jnp.float32)

    out = requantisation(x, mul, add, zero, n_levels, D)
    out = jax.block_until_ready(out)
    ref = _reference(x, mul, add, zero, n_levels, D)
    assert out.shape == (N, C, H, W)
    assert jnp.allclose(out, ref), "mismatch vs reference (main shape)"

    # Exercise the generic padding path: lane-sparse spatial (7x7=49) and a
    # row count that is not a multiple of 8 (N*C = 6).
    x_odd = jnp.round(
        jax.random.uniform(kx, (2, 3, 7, 7), jnp.float32, -4096.0, 4096.0))
    out_odd = requantisation(x_odd, mul[:3], add[:3], zero[:3], n_levels[:3], D)
    out_odd = jax.block_until_ready(out_odd)
    ref_odd = _reference(x_odd, mul[:3], add[:3], zero[:3], n_levels[:3], D)
    assert out_odd.shape == (2, 3, 7, 7)
    assert jnp.allclose(out_odd, ref_odd), "mismatch vs reference (odd shape)"

    print("KERNEL_OK")
</pallas_src>

<mosaic_0001>
module attributes {stable_mosaic.version = 11 : i64} {
  func.func @_requant_kernel(%arg0: i32, %arg1: memref<8x256xf32, #tpu.memory_space<vmem>>, %arg2: memref<8x4xf32, #tpu.memory_space<vmem>>, %arg3: memref<8x256xf32, #tpu.memory_space<vmem>>) attributes {dimension_semantics = [#tpu.dimension_semantics<parallel>], iteration_bounds = array<i64: 1>, scalar_prefetch = 0 : i64, scratch_operands = 0 : i64, tpu.core_type = #tpu.core_type<tc>, window_params = [{transform_indices = @transform_0, window_bounds = array<i64: 8, 256>}, {transform_indices = @transform_1, window_bounds = array<i64: 8, 4>}, {transform_indices = @transform_2, window_bounds = array<i64: 8, 256>}]} {
    %c0 = arith.constant 0 : index
    %c0_0 = arith.constant 0 : index
    %0 = vector.load %arg1[%c0, %c0_0] : memref<8x256xf32, #tpu.memory_space<vmem>>, vector<8x256xf32>
    %c0_1 = arith.constant 0 : index
    %c0_2 = arith.constant 0 : index
    %1 = vector.load %arg2[%c0_1, %c0_2] : memref<8x4xf32, #tpu.memory_space<vmem>>, vector<8x4xf32>
    %2 = vector.extract_strided_slice %1 {offsets = [0, 0], sizes = [8, 1], strides = [1, 1]} : vector<8x4xf32> to vector<8x1xf32>
    %3 = vector.extract_strided_slice %1 {offsets = [0, 1], sizes = [8, 1], strides = [1, 1]} : vector<8x4xf32> to vector<8x1xf32>
    %4 = vector.extract_strided_slice %1 {offsets = [0, 2], sizes = [8, 1], strides = [1, 1]} : vector<8x4xf32> to vector<8x1xf32>
    %5 = vector.extract_strided_slice %1 {offsets = [0, 3], sizes = [8, 1], strides = [1, 1]} : vector<8x4xf32> to vector<8x1xf32>
    %6 = vector.broadcast %2 : vector<8x1xf32> to vector<8x256xf32>
    %7 = arith.mulf %0, %6 : vector<8x256xf32>
    %8 = vector.broadcast %3 : vector<8x1xf32> to vector<8x256xf32>
    %9 = arith.addf %7, %8 : vector<8x256xf32>
    %cst = arith.constant 5.96046448E-8 : f32
    %10 = vector.broadcast %cst : f32 to vector<8x256xf32>
    %11 = arith.mulf %9, %10 : vector<8x256xf32>
    %12 = math.floor %11 : vector<8x256xf32>
    %13 = vector.broadcast %4 : vector<8x1xf32> to vector<8x256xf32>
    %14 = arith.maximumf %13, %12 : vector<8x256xf32>
    %15 = vector.broadcast %5 : vector<8x1xf32> to vector<8x256xf32>
    %16 = arith.minimumf %15, %14 : vector<8x256xf32>
    %c0_3 = arith.constant 0 : index
    %c0_4 = arith.constant 0 : index
    %17 = vector.load %arg3[%c0_3, %c0_4] : memref<8x256xf32, #tpu.memory_space<vmem>>, vector<8x256xf32>
    tpu.vector_store %arg3[%c0_3, %c0_4], %16 {strides = array<i32>} : memref<8x256xf32, #tpu.memory_space<vmem>>, vector<8x256xf32>,
    return
  }
  func.func @transform_0(%arg0: i32) -> (i32, i32) {
    %c0_i32 = arith.constant 0 : i32
    %c0_i32_0 = arith.constant 0 : i32
    return %arg0, %c0_i32 : i32, i32
  }
  func.func @transform_1(%arg0: i32) -> (i32, i32) {
    %c0_i32 = arith.constant 0 : i32
    %c0_i32_0 = arith.constant 0 : i32
    return %arg0, %c0_i32 : i32, i32
  }
  func.func @transform_2(%arg0: i32) -> (i32, i32) {
    %c0_i32 = arith.constant 0 : i32
    %c0_i32_0 = arith.constant 0 : i32
    return %arg0, %c0_i32 : i32, i32
  }
}

</mosaic_0001>

<bundles_post_ra>
// kernel: tpu_custom_call.1
= control target key start
LH: loop header
LB: loop body
LE: loop exit
PB: predicated region body
PF: predicated region fallthrough
CT: control target
= control target key end

     0   :  { %7 = vsyncpa [#allocation3], 0  ;;  %s180_s0 = inlined_call_operand.hbm [shape: f32[8,256], index: 0, kind: input, shape index: {}]   ;;  %s181_s1 = inlined_call_operand.vmem [shape: f32[8,4], index: 1, kind: input, shape index: {}]   ;;  %s182_s2 = inlined_call_operand.hbm [shape: f32[8,256], index: 2, kind: output, shape index: {}]  }
   0x1   :  { %8 = vsyncpa [#allocation4], 0  ;;  %s132_s9 = smov [#allocation2]   ;;  %s84_s13 = scalar_lea.hbm %s180_s0, 256 }
   0x2   :  { %s15_s10 = sshll.u32 %s132_s9, 4  ;;  %p85_p0 = scmp.ne.s32.totalorder %s180_s0, %s84_s13  ;;  %s16_s10 = int_to_ptr.vmem [resolvable:$true] %s15_s10 }
   0x3   :  { %p88_p1 = scmp.lt.u32.totalorder %s84_s13, %s180_s0 }
   0x5   :  { %p90_p2 = pnand %p88_p1, %p85_p0 }
   0x7   :  { %93 = shalt.err (!%p90_p2)
}
   0x8   :  { %s94_s18 = scalar_lea.vmem %s16_s10, 256  ;;  %p99_p4 = scmp.lt.s32.totalorder %s16_s10, %s16_s10 }
   0x9   :  { %p95_p3 = scmp.ne.s32.totalorder %s16_s10, %s94_s18  ;;  %p100_p5 = scmp.lt.s32.totalorder %s94_s18, %s94_s18 }
   0xb   :  { %p101_p6 = por %p100_p5, %p99_p4 }
   0xd   :  { %p102_p7 = pnand %p101_p6, %p95_p3 }
   0xf   :  { %105 = shalt.err (!%p102_p7)
}
  0x10   :  { %18 = dma.hbm_to_vmem [thread:$0]  %s180_s0, 256, %s16_s10, [#allocation3]  }
  0x11   :  { %128 = dma.done.wait [#allocation3], 256  }
  0x12   :  { %129 = vsyncadd [#allocation3], 4294967040  ;;  %v133_v0 = vmov 0   ;;  %v134_v1 = vmov 2   ;;  %v26_v2 = vld [vmem:[%s181_s1] sm:$0xff]  ;;  %v135_v3 = vmov 1  }
  0x13   :  { %79 = vset.pattern.permute.xlu0 %v133_v0  ;;  %81 = vset.pattern.permute.xlu1 %v134_v1  ;;  %v136_v4 = vmov 3   ;;  %v24_v6 = vld [vmem:[#allocation2] sm:$0xff]  ;;  %v25_v7 = vld [vmem:[#allocation2 + $0x8] sm:$0xff]  ;;  %s137_s0 = smov [#allocation5]  }
  0x14   :  { %29 = vperm.xlu0 %79, %v26_v2   ;;  %45 = vperm.xlu1 %81, %v26_v2   ;;  %s64_s1 = sshll.u32 %s137_s0, 4  ;;  %s65_s1 = int_to_ptr.vmem [resolvable:$true] %s64_s1 }
  0x15   :  { %s106_s23 = scalar_lea.vmem %s65_s1, 256  ;;  %p111_p9 = scmp.lt.s32.totalorder %s65_s1, %s65_s1 }
  0x16   :  { %p107_p8 = scmp.ne.s32.totalorder %s65_s1, %s106_s23  ;;  %p112_p10 = scmp.lt.s32.totalorder %s106_s23, %s106_s23 }
  0x18   :  { %80 = vset.pattern.permute.xlu0 %v135_v3  ;;  %82 = vset.pattern.permute.xlu1 %v136_v4  ;;  %p113_p11 = por %p112_p10, %p111_p9 }
  0x19   :  { %35 = vperm.xlu0 %80, %v26_v2   ;;  %51 = vperm.xlu1 %82, %v26_v2  }
  0x1a   :  { %p114_p12 = pnand %p113_p11, %p107_p8 }
  0x1d   :  { %83 = vset.pattern.permute.xlu0 %v136_v4 }
  0x93   :  { %v30_v5 = vpop.permute.xlu0 %29  ;;  %v46_v11 = vpop.permute.xlu1 %45 }
  0x94   :  { %v32_v8 = vmul.f32 %v30_v5, %v24_v6  ;;  %v33_v9 = vmul.f32 %v30_v5, %v25_v7 }
  0x98   :  { %v36_v10 = vpop.permute.xlu0 %35  ;;  %v52_v18 = vpop.permute.xlu1 %51 }
  0x99   :  { %v38_v12 = vadd.f32 %v36_v10, %v32_v8  ;;  %v39_v13 = vadd.f32 %v36_v10, %v33_v9 }
  0x9b   :  { %v40_v14 = vmul.f32 5.9604645e-08, %v38_v12  ;;  %v41_v15 = vmul.f32 5.9604645e-08, %v39_v13 }
  0x9d   :  { %v42_v16 = vfloor.f32 %v40_v14  ;;  %v43_v17 = vfloor.f32 %v41_v15 }
  0x9f   :  { %v48_v19 = vmax.f32 %v46_v11, %v42_v16  ;;  %v49_v20 = vmax.f32 %v46_v11, %v43_v17 }
  0xa1   :  { %v54_v21 = vmin.f32 %v52_v18, %v48_v19  ;;  %v55_v22 = vmin.f32 %v52_v18, %v49_v20 }
  0xa3   :  { %56 = vst [vmem:[#allocation5] sm:$0xff] %v54_v21  ;;  %57 = vst [vmem:[#allocation5 + $0x8] sm:$0xff] %v55_v22 }
  0xa4   :  { %117 = shalt.err (!%p114_p12)
}
  0xa5   :  { %s118_s26 = scalar_lea.hbm %s182_s2, 256 }
  0xa6   :  { %p119_p13 = scmp.ne.s32.totalorder %s182_s2, %s118_s26  ;;  %p122_p0 = scmp.lt.u32.totalorder %s118_s26, %s182_s2 }
  0xa8   :  { %p124_p1 = pnand %p122_p0, %p119_p13 }
  0xaa   :  { %127 = shalt.err (!%p124_p1)
}
  0xab   :  { %67 = dma.vmem_to_hbm [thread:$0]  %s65_s1, 256, %s182_s2, [#allocation4]  }
  0xac   :  { %130 = dma.done.wait [#allocation4], 256  }
  0xad   :  { %131 = vsyncadd [#allocation4], 4294967040 }
  0xae   :  { %71 = vsyncpa [#allocation3], 1 }
  0xaf   :  { %72 = vsyncpa [#allocation4], 1 }

</bundles_post_ra>
